<compile_context>
chip_gen: v7x
topology: tpu7x:2x2x1
jax: 0.10.0
libtpu: 0.0.40
codegen_flags: <defaults>
</compile_context>

<pallas_src>
import functools
import math

import jax
import jax.numpy as jnp
from jax.experimental import pallas as pl
from jax.experimental.pallas import tpu as pltpu

_LANES = 128
_MAX_FOLD = 2048            # max folded lane width for the lane-dense repack
_MIN_GRID_STEPS = 4         # >= 2x TensorCore count on v7x; keeps DMA pipeline busy
_SMALL_TOTAL_BYTES = 512 << 10


def _chip_budget():
    """(target_z_tile_bytes, vmem_limit_bytes), tuned per TPU generation.

    The kernel is purely HBM-bound; the only chip-specific decisions are how big
    a tile to stream (amortize ~0.35us per-grid-step overhead) and the scoped
    VMEM limit.  v5e/v6e have 128 MiB physical VMEM, v7x only 64 MiB per TC.
    """
    vmem_cap = 128 << 20
    try:
        info = pltpu.get_tpu_info()
        vmem_cap = int(getattr(info, "vmem_capacity_bytes", vmem_cap))
    except Exception:
        pass
    # Raise the default scoped limit (16 MiB on v5e / 32 MiB on v6e,v7x) but keep
    # >= 25% of physical VMEM as headroom for compiler-internal scratch.
    vmem_limit = min(48 << 20, (vmem_cap * 3) // 4)
    # 8 MiB z-tile -> 2x(in) + 2x(out) double-buffered = 32 MiB working set.
    target = 8 << 20
    while 4 * target + (4 << 20) > vmem_limit and target > (1 << 20):
        target //= 2
    return target, vmem_limit


def _dt_gaussian_kernel(z_ref, ws_ref, wi_ref, o_ref, *, ok: bool):
    ws = jnp.abs(ws_ref[0])          # scalar |weight_shared| from SMEM
    wi = jnp.abs(wi_ref[...])        # (1, TC) |weight_independent|
    # Fuse both weights into a single (1, TC) row (one vreg of work per step),
    # then the (TN, TC) hot path is one broadcasted multiply hidden under DMA.
    w = wi * ws if ok else wi + ws
    o_ref[...] = z_ref[...] * w


def _run_2d(z2, ws, wi2, ok: bool, target_block_bytes: int, vmem_limit_bytes: int):
    rows, cols = z2.shape
    itemsize = jnp.dtype(z2.dtype).itemsize
    bytes_per_row = cols * itemsize
    kernel = functools.partial(_dt_gaussian_kernel, ok=bool(ok))

    # ---- wide-row path: 2-D grid (8-row stripes x 128-multiple column tiles) ----
    if bytes_per_row * 8 > target_block_bytes and cols >= 2 * _LANES and rows >= 1:
        tn = 8 if rows >= 8 else rows
        tc = (target_block_bytes // (tn * itemsize)) // _LANES * _LANES
        tc = max(_LANES, min(tc, (cols // _LANES) * _LANES))
        grid = (pl.cdiv(rows, tn), pl.cdiv(cols, tc))
        return pl.pallas_call(
            kernel,
            out_shape=jax.ShapeDtypeStruct((rows, cols), z2.dtype),
            grid=grid,
            in_specs=[
                pl.BlockSpec((tn, tc), lambda i, j: (i, j)),          # z tile
                pl.BlockSpec(memory_space=pltpu.MemorySpace.SMEM),    # |w_shared| scalar
                pl.BlockSpec((1, tc), lambda i, j: (0, j)),           # w_independent slice
            ],
            out_specs=pl.BlockSpec((tn, tc), lambda i, j: (i, j)),
            compiler_params=pltpu.CompilerParams(
                dimension_semantics=("parallel", "parallel"),
                vmem_limit_bytes=vmem_limit_bytes),
        )(z2, ws, wi2)

    # ---- normal path: 1-D grid over row stripes, full width --------------------
    max_rows = max(1, target_block_bytes // max(1, bytes_per_row))
    total_bytes = rows * bytes_per_row
    if total_bytes > _SMALL_TOTAL_BYTES and rows >= _MIN_GRID_STEPS * 8:
        # Never collapse a non-trivial array to one grid step: keep >= 4 blocks so
        # the DMA/compute/writeback pipeline overlaps and both v7x TCs get work.
        cap = max(8, ((rows // _MIN_GRID_STEPS) // 8) * 8)
        max_rows = min(max_rows, cap)
    if max_rows >= rows:
        tn = rows                            # single block == full row extent
    else:
        tn = max(8, (max_rows // 8) * 8)     # (8,128) rule when block < full dim
    grid = (pl.cdiv(rows, tn),)

    return pl.pallas_call(
        kernel,
        out_shape=jax.ShapeDtypeStruct((rows, cols), z2.dtype),
        grid=grid,
        in_specs=[
            pl.BlockSpec((tn, cols), lambda i: (i, 0)),           # z row-tile
            pl.BlockSpec(memory_space=pltpu.MemorySpace.SMEM),    # |w_shared| scalar
            pl.BlockSpec((1, cols), lambda i: (0, 0)),            # w_independent row
        ],
        out_specs=pl.BlockSpec((tn, cols), lambda i: (i, 0)),
        # TODO(synk): if profiling on v7x shows only one TC active, switch the row
        # axis to pltpu.CORE_PARALLEL (no-op on single-TC v5e/v6e).
        compiler_params=pltpu.CompilerParams(
            dimension_semantics=("parallel",),
            vmem_limit_bytes=vmem_limit_bytes),
    )(z2, ws, wi2)


def distribution_transformer_gaussian(z, weight_shared, weight_independent, ok: bool):
    """JAX/Pallas equivalent of Distribution_Transformer_Gaussian.forward.

    z:                  (N, d) float32
    weight_shared:      (1,)   float32
    weight_independent: (1, d) float32
    ok:                 python bool (static branch, same as PyTorch `if ok == True`)
    """
    N, d = z.shape
    assert weight_independent.reshape(-1).shape[0] == d
    ws = weight_shared.reshape(1).astype(z.dtype)
    wi = weight_independent.reshape(1, d).astype(z.dtype)

    target_block_bytes, vmem_limit_bytes = _chip_budget()

    # Lane-dense repack: the op is elementwise with a weight pattern periodic in d,
    # so whenever d is not a 128-multiple fold rows into the lane dim using
    # L = lcm(d, 128) (widened toward ~1024 lanes) -> unmasked full-width stores.
    z2, wi2, orig_shape = z, wi, None
    if d % _LANES != 0:
        L = (d * _LANES) // math.gcd(d, _LANES)        # lcm(d, 128)
        if L <= _MAX_FOLD and (N * d) % L == 0:
            while L < 1024 and 2 * L <= _MAX_FOLD and (N * d) % (2 * L) == 0:
                L *= 2
            z2 = z.reshape((N * d) // L, L)
            wi2 = jnp.tile(wi, (1, L // d))            # weight depends only on j % d
            orig_shape = (N, d)

    out = _run_2d(z2, ws, wi2, bool(ok), target_block_bytes, vmem_limit_bytes)
    if orig_shape is not None:
        out = out.reshape(orig_shape)
    return out


def _reference(z, weight_shared, weight_independent, ok: bool):
    ws = jnp.abs(weight_shared)            # (1,)
    wi = jnp.abs(weight_independent)       # (1, d)
    x = jnp.zeros_like(z)
    x = x + z * ws
    x = x + z * wi
    if ok:
        x = jnp.zeros_like(z)
        x = x + z * ws
        x = x * wi
    return x


if __name__ == "__main__":
    key = jax.random.PRNGKey(0)
    k_z, k_ws, k_wi, k_z2, k_wi2 = jax.random.split(key, 5)

    # Small shape consistent with the module: batch N=8, feature dim d=32.
    N, d = 8, 32
    z = jax.random.normal(k_z, (N, d), dtype=jnp.float32)
    # Deterministic parameter init mirroring normal_(0, 0.01)
    weight_shared = 0.01 * jax.random.normal(k_ws, (1,), dtype=jnp.float32)
    weight_independent = 0.01 * jax.random.normal(k_wi, (1, d), dtype=jnp.float32)

    for ok in (False, True):
        out = distribution_transformer_gaussian(z, weight_shared, weight_independent, ok)
        out = jax.block_until_ready(out)
        ref = _reference(z, weight_shared, weight_independent, ok)
        assert out.shape == (N, d) and out.dtype == jnp.float32
        assert jnp.allclose(out, ref, atol=1e-6, rtol=1e-6), f"mismatch (ok={ok}, d={d})"

    # Second shape exercising the generalized lane-dense repack (d=48 -> L=1536).
    N2, d2 = 64, 48
    z_b = jax.random.normal(k_z2, (N2, d2), dtype=jnp.float32)
    wi_b = 0.01 * jax.random.normal(k_wi2, (1, d2), dtype=jnp.float32)
    for ok in (False, True):
        out = distribution_transformer_gaussian(z_b, weight_shared, wi_b, ok)
        out = jax.block_until_ready(out)
        ref = _reference(z_b, weight_shared, wi_b, ok)
        assert out.shape == (N2, d2)
        assert jnp.allclose(out, ref, atol=1e-6, rtol=1e-6), f"mismatch (ok={ok}, d={d2})"

    print("KERNEL_OK")
</pallas_src>

<mosaic_0001>
module attributes {stable_mosaic.version = 11 : i64} {
  func.func @_dt_gaussian_kernel(%arg0: i32, %arg1: memref<1x256xf32, #tpu.memory_space<vmem>>, %arg2: memref<1xf32, #tpu.memory_space<smem>>, %arg3: memref<1x256xf32, #tpu.memory_space<vmem>>, %arg4: memref<1x256xf32, #tpu.memory_space<vmem>>) attributes {dimension_semantics = [#tpu.dimension_semantics<parallel>], iteration_bounds = array<i64: 1>, scalar_prefetch = 0 : i64, scratch_operands = 0 : i64, tpu.core_type = #tpu.core_type<tc>, window_params = [{transform_indices = @transform_0, window_bounds = array<i64: 1, 256>}, {transform_indices = @transform_1, window_bounds = array<i64: 1>}, {pipeline_mode = #tpu.pipeline_mode<synchronous>, transform_indices = @transform_2, window_bounds = array<i64: 1, 256>}, {transform_indices = @transform_3, window_bounds = array<i64: 1, 256>}]} {
    %c0 = arith.constant 0 : index
    %0 = memref.load %arg2[%c0] : memref<1xf32, #tpu.memory_space<smem>>
    %1 = math.absf %0 : f32
    %c0_0 = arith.constant 0 : index
    %c0_1 = arith.constant 0 : index
    %2 = vector.load %arg3[%c0_0, %c0_1] : memref<1x256xf32, #tpu.memory_space<vmem>>, vector<1x256xf32>
    %3 = math.absf %2 : vector<1x256xf32>
    %4 = vector.broadcast %1 : f32 to vector<1x256xf32>
    %5 = arith.addf %3, %4 : vector<1x256xf32>
    %c0_2 = arith.constant 0 : index
    %c0_3 = arith.constant 0 : index
    %6 = vector.load %arg1[%c0_2, %c0_3] : memref<1x256xf32, #tpu.memory_space<vmem>>, vector<1x256xf32>
    %7 = arith.mulf %6, %5 : vector<1x256xf32>
    %c0_4 = arith.constant 0 : index
    %c0_5 = arith.constant 0 : index
    %8 = vector.load %arg4[%c0_4, %c0_5] : memref<1x256xf32, #tpu.memory_space<vmem>>, vector<1x256xf32>
    tpu.vector_store %arg4[%c0_4, %c0_5], %7 {strides = array<i32>} : memref<1x256xf32, #tpu.memory_space<vmem>>, vector<1x256xf32>,
    return
  }
  func.func @transform_0(%arg0: i32) -> (i32, i32) {
    %c0_i32 = arith.constant 0 : i32
    %c0_i32_0 = arith.constant 0 : i32
    return %arg0, %c0_i32 : i32, i32
  }
  func.func @transform_1(%arg0: i32) -> i32 {
    %c0_i32 = arith.constant 0 : i32
    %c0_i32_0 = arith.constant 0 : i32
    return %c0_i32 : i32
  }
  func.func @transform_2(%arg0: i32) -> (i32, i32) {
    %c0_i32 = arith.constant 0 : i32
    %c0_i32_0 = arith.constant 0 : i32
    %c0_i32_1 = arith.constant 0 : i32
    return %c0_i32, %c0_i32_0 : i32, i32
  }
  func.func @transform_3(%arg0: i32) -> (i32, i32) {
    %c0_i32 = arith.constant 0 : i32
    %c0_i32_0 = arith.constant 0 : i32
    return %arg0, %c0_i32 : i32, i32
  }
}

</mosaic_0001>

<bundles_post_ra>
// kernel: tpu_custom_call.1
= control target key start
LH: loop header
LB: loop body
LE: loop exit
PB: predicated region body
PF: predicated region fallthrough
CT: control target
= control target key end

     0   :  { %v24_v1 = vlaneseq  ;;  %s110_s0 = inlined_call_operand.vmem [shape: f32[1,256], index: 0, kind: input, shape index: {}]   ;;  %s111_s1 = inlined_call_operand.<no memory space> [shape: f32[1], index: 1, kind: input, shape index: {}]   ;;  %s112_s2 = inlined_call_operand.vmem [shape: f32[1,256], index: 2, kind: input, shape index: {}]   ;;  %s113_s3 = inlined_call_operand.hbm [shape: f32[1,256], index: 3, kind: output, shape index: {}]  }
   0x1   :  { %s17_s14 = sand.u32 2147483647, %s111_s1  ;;  %v18_v0 = vld [vmem:[%s112_s2] sm:$0x3] }
   0x2   :  { %v19_v2 = vand.u32 2147483647, %v18_v0  ;;  %v20_v3 = vstv %s17_s14 }
   0x3   :  { %9 = vsyncpa [#allocation4], 0  ;;  %v22_v4 = vld [vmem:[%s110_s0] sm:$0x3]  ;;  %s68_s19 = smov [#allocation3]   ;;  %vm26_vm0 = vcmp.lt.s32.totalorder %v24_v1, 256 }
   0x4   :  { %s35_s20 = sshll.u32 %s68_s19, 4  ;;  %v21_v5 = vadd.f32 %v20_v3, %v19_v2  ;;  %s36_s20 = int_to_ptr.vmem [resolvable:$true] %s35_s20 }
   0x5   :  { %s44_s1 = scalar_lea.vmem %s36_s20, 32  ;;  %p49_p1 = scmp.lt.s32.totalorder %s36_s20, %s36_s20 }
   0x6   :  { %v23_v6 = vmul.f32 %v22_v4, %v21_v5  ;;  %p45_p0 = scmp.ne.s32.totalorder %s36_s20, %s44_s1  ;;  %p50_p2 = scmp.lt.s32.totalorder %s44_s1, %s44_s1 }
   0x8   :  { %28 = vst.msk [vmem:[#allocation3] sm:$0x3] %vm26_vm0, %v23_v6  ;;  %p51_p3 = por %p50_p2, %p49_p1 }
   0xa   :  { %p52_p4 = pnand %p51_p3, %p45_p0 }
   0xc   :  { %55 = shalt.err (!%p52_p4)
}
   0xd   :  { %s56_s22 = scalar_lea.hbm %s113_s3, 32 }
   0xe   :  { %p57_p5 = scmp.ne.s32.totalorder %s113_s3, %s56_s22  ;;  %p60_p6 = scmp.lt.u32.totalorder %s56_s22, %s113_s3 }
  0x10   :  { %p62_p7 = pnand %p60_p6, %p57_p5 }
  0x12   :  { %65 = shalt.err (!%p62_p7)
}
  0x13   :  { %38 = dma.vmem_to_hbm [thread:$0]  %s36_s20, 32, %s113_s3, [#allocation4]  }
  0x14   :  { %66 = dma.done.wait [#allocation4], 32  }
  0x15   :  { %67 = vsyncadd [#allocation4], 4294967264 }
  0x16   :  { %42 = vsyncpa [#allocation4], 1 }

</bundles_post_ra>
